<compile_context>
chip_gen: v6e
topology: v6e:2x2x1
jax: 0.10.0
libtpu: 0.0.40
codegen_flags: <defaults>
</compile_context>

<pallas_src>
import jax
import jax.numpy as jnp
from jax import lax
from jax.experimental import pallas as pl
from jax.experimental.pallas import tpu as pltpu

IN_FEATURES = 2048
OUT_FEATURES = 2


def _round_up(n, m):
    return ((n + m - 1) // m) * m


def _is_v7x():
    """Best-effort chip detection; never raises."""
    try:
        kind = jax.devices()[0].device_kind.lower()
    except Exception:
        return False
    return "7" in kind


def _default_tile_b():
    # v7x: 3.2 TB/s HBM makes the fixed per-step overhead relatively expensive -> bigger tile.
    return 2048 if _is_v7x() else 1024


def _face_attr_kernel(x_ref, w_ref, b_ref, o_ref):
    # logits = x @ W^T + b, with W kept in its natural (out=2, in=2048) layout.
    # Contract dim 1 of x with dim 1 of w (trans_b matmul); accumulate in f32 on the MXU.
    logits = lax.dot_general(
        x_ref[...], w_ref[...],
        dimension_numbers=(((1,), (1,)), ((), ())),
        preferred_element_type=jnp.float32,
    ) + b_ref[...].astype(jnp.float32)

    # Closed-form 2-class log-softmax: out = logits - logsumexp(l0, l1), with
    # logsumexp(l0, l1) = max(l0, l1) + log1p(exp(-|l1 - l0|)).
    # Pure elementwise VPU/EUP work, no cross-lane reductions; exp argument <= 0 so no overflow,
    # and log1p keeps precision when |d| is large.
    l0 = logits[:, 0:1]
    l1 = logits[:, 1:2]
    d = jnp.abs(l1 - l0)
    lse = jnp.maximum(l0, l1) + jnp.log1p(jnp.exp(-d))
    o_ref[...] = (logits - lse).astype(o_ref.dtype)


def face_attribute_decoder(x, w, b, *, tile_b=None):
    """Forward pass of FaceAttributeDecoder.

    x: (B, 2048) f32 or bf16 activations.
    w: (2, 2048)  weight in natural PyTorch (out, in) layout, same dtype as x.
    b: (1, 2)     bias (f32 recommended).
    returns (B, 2) log-probabilities in x.dtype.
    """
    B, F = x.shape
    assert F == IN_FEATURES
    assert w.shape == (OUT_FEATURES, IN_FEATURES)
    assert b.shape == (1, OUT_FEATURES)

    if tile_b is None:
        tile_b = _default_tile_b()

    # Clamp the tile to the (8-aligned) batch so tiny batches don't allocate a huge block.
    tile_b = min(tile_b, _round_up(B, 8))
    tile_b = max(tile_b, 8)

    # On v7x, make sure there are >= 2 grid steps (when the batch allows it) so the
    # ("parallel",) batch axis is sharded across both TensorCores.
    if _is_v7x() and pl.cdiv(B, tile_b) < 2 and B > 8:
        tile_b = _round_up(pl.cdiv(B, 2), 8)

    grid = (pl.cdiv(B, tile_b),)

    itemsize = jnp.dtype(x.dtype).itemsize
    # Double-buffered x tile + lane-padded output tile + small weight/bias blocks + headroom.
    needed_vmem = 2 * tile_b * IN_FEATURES * itemsize + 2 * tile_b * 128 * 4 + (1 << 20)
    vmem_limit = min(48 * 1024 * 1024, max(32 * 1024 * 1024, int(needed_vmem) + (4 << 20)))

    w_bytes = OUT_FEATURES * IN_FEATURES * jnp.dtype(w.dtype).itemsize
    cost = pl.CostEstimate(
        flops=2 * B * IN_FEATURES * OUT_FEATURES,
        transcendentals=2 * B,  # one exp + one log1p per row
        bytes_accessed=B * IN_FEATURES * itemsize + w_bytes
        + OUT_FEATURES * 4 + B * OUT_FEATURES * itemsize,
    )

    return pl.pallas_call(
        _face_attr_kernel,
        out_shape=jax.ShapeDtypeStruct((B, OUT_FEATURES), x.dtype),
        grid=grid,
        in_specs=[
            # Streamed batch tile of activations.
            pl.BlockSpec((tile_b, IN_FEATURES), lambda i: (i, 0)),
            # Weight/bias: same block every step -> stay resident in VMEM (no re-DMA).
            pl.BlockSpec((OUT_FEATURES, IN_FEATURES), lambda i: (0, 0)),
            pl.BlockSpec((1, OUT_FEATURES), lambda i: (0, 0)),
        ],
        out_specs=pl.BlockSpec((tile_b, OUT_FEATURES), lambda i: (i, 0)),
        compiler_params=pltpu.CompilerParams(
            dimension_semantics=("parallel",),  # batch tiles independent (v7x 2-TC sharding)
            vmem_limit_bytes=vmem_limit,
        ),
        cost_estimate=cost,
    )(x, w, b)


def _init_params(key, dtype=jnp.float32):
    """Deterministic init mimicking nn.Linear default (uniform +-1/sqrt(fan_in))."""
    kw, kb = jax.random.split(key)
    bound = 1.0 / jnp.sqrt(jnp.float32(IN_FEATURES))
    # Natural PyTorch layout: weight (out, in) = (2, 2048).
    w = jax.random.uniform(kw, (OUT_FEATURES, IN_FEATURES),
                           dtype=jnp.float32, minval=-bound, maxval=bound).astype(dtype)
    b = jax.random.uniform(kb, (1, OUT_FEATURES),
                           dtype=jnp.float32, minval=-bound, maxval=bound)
    return w, b


def _reference(x, w, b):
    logits = x.astype(jnp.float32) @ w.astype(jnp.float32).T + b
    return jax.nn.log_softmax(logits, axis=1).astype(x.dtype)


if __name__ == "__main__":
    key = jax.random.PRNGKey(0)
    kx, kp, kx2 = jax.random.split(key, 3)
    w, b = _init_params(kp)

    # Case 1: small batch, single grid step.
    batch = 8
    x = jax.random.normal(kx, (batch, IN_FEATURES), dtype=jnp.float32)
    out = jax.block_until_ready(face_attribute_decoder(x, w, b))
    ref = _reference(x, w, b)
    assert out.shape == (batch, OUT_FEATURES)
    assert jnp.allclose(out, ref, atol=1e-5, rtol=1e-5), "mismatch vs JAX reference (B=8)"

    # Case 2: multi-step grid with a partial last tile (exercises pipelining + masked writes).
    batch2 = 40
    x2 = jax.random.normal(kx2, (batch2, IN_FEATURES), dtype=jnp.float32)
    out2 = jax.block_until_ready(face_attribute_decoder(x2, w, b, tile_b=16))
    ref2 = _reference(x2, w, b)
    assert out2.shape == (batch2, OUT_FEATURES)
    assert jnp.allclose(out2, ref2, atol=1e-5, rtol=1e-5), "mismatch vs JAX reference (B=40)"

    # Case 3: bf16 activations/weights, f32 accumulation inside the kernel.
    xb = x.astype(jnp.bfloat16)
    wb = w.astype(jnp.bfloat16)
    out3 = jax.block_until_ready(face_attribute_decoder(xb, wb, b))
    ref3 = _reference(xb, wb, b)
    assert out3.shape == (batch, OUT_FEATURES)
    assert jnp.allclose(out3.astype(jnp.float32), ref3.astype(jnp.float32),
                        atol=3e-2, rtol=3e-2), "mismatch vs JAX reference (bf16)"

    print("KERNEL_OK")
</pallas_src>

<mosaic_0001>
module attributes {stable_mosaic.version = 11 : i64} {
  func.func @_face_attr_kernel(%arg0: i32, %arg1: memref<8x2048xf32, #tpu.memory_space<vmem>>, %arg2: memref<2x2048xf32, #tpu.memory_space<vmem>>, %arg3: memref<1x2xf32, #tpu.memory_space<vmem>>, %arg4: memref<8x2xf32, #tpu.memory_space<vmem>>) attributes {dimension_semantics = [#tpu.dimension_semantics<parallel>], iteration_bounds = array<i64: 1>, scalar_prefetch = 0 : i64, scratch_operands = 0 : i64, tpu.core_type = #tpu.core_type<tc>, window_params = [{transform_indices = @transform_0, window_bounds = array<i64: 8, 2048>}, {pipeline_mode = #tpu.pipeline_mode<synchronous>, transform_indices = @transform_1, window_bounds = array<i64: 2, 2048>}, {pipeline_mode = #tpu.pipeline_mode<synchronous>, transform_indices = @transform_2, window_bounds = array<i64: 1, 2>}, {transform_indices = @transform_3, window_bounds = array<i64: 8, 2>}]} {
    %c0 = arith.constant 0 : index
    %c0_0 = arith.constant 0 : index
    %0 = vector.load %arg1[%c0, %c0_0] : memref<8x2048xf32, #tpu.memory_space<vmem>>, vector<8x2048xf32>
    %c0_1 = arith.constant 0 : index
    %c0_2 = arith.constant 0 : index
    %1 = vector.load %arg2[%c0_1, %c0_2] : memref<2x2048xf32, #tpu.memory_space<vmem>>, vector<2x2048xf32>
    %cst = arith.constant dense<0.000000e+00> : vector<8x2xf32>
    %2 = tpu.matmul %0, %1, %cst {dimension_numbers = #tpu.dot_dimension_numbers<[1], [1], [0], [0], [0, 0, 1, 0], [], []>} : vector<8x2048xf32>, vector<2x2048xf32>, vector<8x2xf32> -> vector<8x2xf32>
    %c0_3 = arith.constant 0 : index
    %c0_4 = arith.constant 0 : index
    %3 = vector.load %arg3[%c0_3, %c0_4] : memref<1x2xf32, #tpu.memory_space<vmem>>, vector<1x2xf32>
    %4 = vector.broadcast %3 : vector<1x2xf32> to vector<8x2xf32>
    %5 = arith.addf %2, %4 : vector<8x2xf32>
    %6 = vector.extract_strided_slice %5 {offsets = [0, 0], sizes = [8, 1], strides = [1, 1]} : vector<8x2xf32> to vector<8x1xf32>
    %7 = vector.extract_strided_slice %5 {offsets = [0, 1], sizes = [8, 1], strides = [1, 1]} : vector<8x2xf32> to vector<8x1xf32>
    %8 = arith.subf %7, %6 : vector<8x1xf32>
    %9 = math.absf %8 : vector<8x1xf32>
    %10 = arith.maximumf %6, %7 : vector<8x1xf32>
    %cst_5 = arith.constant 0.000000e+00 : f32
    %11 = vector.broadcast %cst_5 : f32 to vector<8x1xf32>
    %12 = arith.subf %11, %9 : vector<8x1xf32>
    %13 = math.exp %12 : vector<8x1xf32>
    %14 = math.log1p %13 : vector<8x1xf32>
    %15 = arith.addf %10, %14 : vector<8x1xf32>
    %16 = vector.broadcast %15 : vector<8x1xf32> to vector<8x2xf32>
    %17 = arith.subf %5, %16 : vector<8x2xf32>
    %c0_6 = arith.constant 0 : index
    %c0_7 = arith.constant 0 : index
    %18 = vector.load %arg4[%c0_6, %c0_7] : memref<8x2xf32, #tpu.memory_space<vmem>>, vector<8x2xf32>
    tpu.vector_store %arg4[%c0_6, %c0_7], %17 {strides = array<i32>} : memref<8x2xf32, #tpu.memory_space<vmem>>, vector<8x2xf32>,
    return
  }
  func.func @transform_0(%arg0: i32) -> (i32, i32) {
    %c0_i32 = arith.constant 0 : i32
    %c0_i32_0 = arith.constant 0 : i32
    return %arg0, %c0_i32 : i32, i32
  }
  func.func @transform_1(%arg0: i32) -> (i32, i32) {
    %c0_i32 = arith.constant 0 : i32
    %c0_i32_0 = arith.constant 0 : i32
    %c0_i32_1 = arith.constant 0 : i32
    return %c0_i32, %c0_i32_0 : i32, i32
  }
  func.func @transform_2(%arg0: i32) -> (i32, i32) {
    %c0_i32 = arith.constant 0 : i32
    %c0_i32_0 = arith.constant 0 : i32
    %c0_i32_1 = arith.constant 0 : i32
    return %c0_i32, %c0_i32_0 : i32, i32
  }
  func.func @transform_3(%arg0: i32) -> (i32, i32) {
    %c0_i32 = arith.constant 0 : i32
    %c0_i32_0 = arith.constant 0 : i32
    return %arg0, %c0_i32 : i32, i32
  }
}

</mosaic_0001>

<bundles_post_ra>
// kernel: tpu_custom_call.1
= control target key start
LH: loop header
LB: loop body
LE: loop exit
PB: predicated region body
PF: predicated region fallthrough
CT: control target
= control target key end

     0   :  { %8 = vsyncpa [#allocation3], 0  ;;  %s853_s0 = inlined_call_operand.hbm [shape: f32[8,2048], index: 0, kind: input, shape index: {}]   ;;  %s854_s1 = inlined_call_operand.hbm [shape: f32[2,2048], index: 1, kind: input, shape index: {}]   ;;  %s855_s2 = inlined_call_operand.vmem [shape: f32[1,2], index: 2, kind: input, shape index: {}]   ;;  %s856_s3 = inlined_call_operand.vmem [shape: f32[8,2], index: 3, kind: output, shape index: {}]  }
   0x1   :  { %9 = vsyncpa [#allocation5], 0  ;;  %s815_s12 = smov [#allocation2]   ;;  %s816_s14 = smov [#allocation4]  }
   0x2   :  { %s16_s13 = sshll.u32 %s815_s12, 4  ;;  %s26_s15 = sshll.u32 %s816_s14, 4  ;;  %s17_s13 = int_to_ptr.vmem [resolvable:$true] %s16_s13  ;;  %s27_s15 = int_to_ptr.vmem [resolvable:$true] %s26_s15 }
   0x3   :  { %s779_s16 = scalar_lea.vmem %s17_s13, 2048  ;;  %p784_p1 = scmp.lt.s32.totalorder %s17_s13, %s17_s13 }
   0x4   :  { %p780_p0 = scmp.ne.s32.totalorder %s17_s13, %s779_s16  ;;  %p785_p2 = scmp.lt.s32.totalorder %s779_s16, %s779_s16 }
   0x6   :  { %p786_p3 = por %p785_p2, %p784_p1 }
   0x8   :  { %p787_p4 = pnand %p786_p3, %p780_p0 }
   0xa   :  { %790 = shalt.err (!%p787_p4)
}
   0xb   :  { %19 = dma.hbm_to_vmem [thread:$0]  %s853_s0, 2048, %s17_s13, [#allocation3]  }
   0xc   :  { %s799_s19 = scalar_lea.vmem %s27_s15, 512  ;;  %p804_p6 = scmp.lt.s32.totalorder %s27_s15, %s27_s15 }
   0xd   :  { %p800_p5 = scmp.ne.s32.totalorder %s27_s15, %s799_s19  ;;  %p805_p7 = scmp.lt.s32.totalorder %s799_s19, %s799_s19 }
   0xf   :  { %p806_p8 = por %p805_p7, %p804_p6 }
  0x11   :  { %p807_p9 = pnand %p806_p8, %p800_p5 }
  0x13   :  { %810 = shalt.err (!%p807_p9)
}
  0x14   :  { %29 = dma.hbm_to_vmem [thread:$0]  %s854_s1, 512, %s27_s15, [#allocation5]  }
  0x15   :  { %811 = dma.done.wait [#allocation3], 2048  }
  0x16   :  { %812 = vsyncadd [#allocation3], 4294965248 }
  0x17   :  { %813 = dma.done.wait [#allocation5], 512  }
  0x18   :  { %814 = vsyncadd [#allocation5], 4294966784  ;;  %v73_v0 = vlaneseq  ;;  %v817_v1 = vmov 1983009808   ;;  %v54_v6 = vld [vmem:[#allocation4] sm:$0xff]  ;;  %v39_v7 = vld [vmem:[#allocation2 + $0x8] sm:$0xff] }
  0x19   :  { %v71_v2 = vunpack.c.l.s4 %v817_v1  ;;  %v69_v9 = vcombine.high %v54_v6, %v54_v6  ;;  %217 = vmatprep.mubr.f32.mxu0 %v39_v7  ;;  %v55_v10 = vld [vmem:[#allocation4 + $0x8] sm:$0xff]  ;;  %v41_v11 = vld [vmem:[#allocation2 + $0x18] sm:$0xff]  ;;  %v56_v14 = vld [vmem:[#allocation4 + $0x10] sm:$0xff]  ;;  %s819_s22 = smov 127   ;;  %vm746_vm1 = vcmask 15360  }
  0x1a   :  { %v74_v3 = vshrl.u32 %v73_v0, 7  ;;  %287 = vmatprep.mubr.f32.mxu1 %v41_v11  ;;  %v86_v13 = vcombine.high %v55_v10, %v55_v10  ;;  %v103_v18 = vcombine.high %v56_v14, %v56_v14  ;;  %v57_v21 = vld [vmem:[#allocation4 + $0x18] sm:$0xff]  ;;  %v38_v24 = vld [vmem:[#allocation2] sm:$0xff]  ;;  %v43_v27 = vld [vmem:[#allocation2 + $0x28] sm:$0xff] }
  0x1b   :  { %v72_v4 = vunpack.c.0.s8 %v71_v2  ;;  %v120_v26 = vcombine.high %v57_v21, %v57_v21  ;;  %v40_v30 = vld [vmem:[#allocation2 + $0x10] sm:$0xff]  ;;  %v45_v31 = vld [vmem:[#allocation2 + $0x38] sm:$0xff]  ;;  %v42_v34 = vld [vmem:[#allocation2 + $0x20] sm:$0xff] }
  0x1c   :  { %v47_v35 = vld [vmem:[#allocation2 + $0x48] sm:$0xff]  ;;  %v44_v37 = vld [vmem:[#allocation2 + $0x30] sm:$0xff]  ;;  %v49_v38 = vld [vmem:[#allocation2 + $0x58] sm:$0xff] }
  0x1d   :  { %v75_v5 = vsub.s32 %v72_v4, %v74_v3  ;;  %v46_v40 = vld [vmem:[#allocation2 + $0x40] sm:$0xff]  ;;  %v51_v41 = vld [vmem:[#allocation2 + $0x68] sm:$0xff]  ;;  %v48_v42 = vld [vmem:[#allocation2 + $0x50] sm:$0xff] }
  0x1e   :  { %v53_v43 = vld [vmem:[#allocation2 + $0x78] sm:$0xff]  ;;  %v50_v44 = vld [vmem:[#allocation2 + $0x60] sm:$0xff]  ;;  %v52_v45 = vld [vmem:[#allocation2 + $0x70] sm:$0xff] }
  0x1f   :  { %v76_v8 = vrot.slane %v54_v6, %v75_v5  ;;  %v93_v12 = vrot.slane %v55_v10, %v75_v5  ;;  %v83_v16 = vrot.slane %v69_v9, %v75_v5  ;;  %v110_v17 = vrot.slane %v56_v14, %v75_v5  ;;  %v754_v46 = vld [vmem:[%s855_s2] ss:$0 sm:$0xff]  ;;  %s818_s2 = smov 1  }
  0x20   :  { %v100_v20 = vrot.slane %v86_v13, %v75_v5  ;;  %v117_v23 = vrot.slane %v103_v18, %v75_v5  ;;  %v127_v29 = vrot.slane %v57_v21, %v75_v5  ;;  %v134_v33 = vrot.slane %v120_v26, %v75_v5 }
  0x21   :  { %v84_v15 = vcombine.high %v76_v8, %v76_v8  ;;  %v101_v19 = vcombine.high %v93_v12, %v93_v12  ;;  %v85_v22 = vcombine.high %v83_v16, %v83_v16  ;;  %v118_v28 = vcombine.high %v110_v17, %v110_v17 }
  0x22   :  { %v102_v25 = vcombine.high %v100_v20, %v100_v20  ;;  %v119_v32 = vcombine.high %v117_v23, %v117_v23  ;;  %v135_v36 = vcombine.high %v127_v29, %v127_v29  ;;  %v136_v39 = vcombine.high %v134_v33, %v134_v33 }
  0x23   :  { %183 = vmatprep.subr.mxu0 %v84_v15  ;;  %253 = vmatprep.subr.mxu1 %v85_v22  ;;  %v820_v14 = vmov 0  }
  0x24   :  { %184 = vmatpush1.xpose.msra.mxu0 %v76_v8  ;;  %254 = vmatpush1.xpose.msra.mxu1 %v83_v16 }
  0x25   :  { %323 = vmatprep.subr.mxu0 %v101_v19  ;;  %393 = vmatprep.subr.mxu1 %v102_v25 }
  0x26   :  { %761 = vset.pattern.permute.xlu1 %v820_v14  ;;  %762 = vset.pattern.permute.xlu0 %v820_v14 }
  0x27   :  { %218 = vmatmul.mubr.f32.vlgmr.msra.gmra.mxu0 %v38_v24  ;;  %288 = vmatmul.mubr.f32.vlgmr.msra.gmra.mxu1 %v40_v30 }
  0x28   :  { %324 = vmatpush1.xpose.msra.mxu0 %v93_v12  ;;  %357 = vmatprep.mubr.f32.mxu0 %v43_v27 }
  0x29   :  { %463 = vmatprep.subr.mxu0 %v118_v28  ;;  %394 = vmatpush1.xpose.msra.mxu1 %v100_v20 }
  0x2a   :  { %427 = vmatprep.mubr.f32.mxu1 %v45_v31  ;;  %533 = vmatprep.subr.mxu1 %v119_v32 }
  0x2b   :  { %358 = vmatmul.mubr.f32.vlgmr.msra.gmra.mxu0 %v42_v34 }
  0x2c   :  { %464 = vmatpush1.xpose.msra.mxu0 %v110_v17  ;;  %497 = vmatprep.mubr.f32.mxu0 %v47_v35 }
  0x2d   :  { %428 = vmatmul.mubr.f32.vlgmr.msra.gmra.mxu1 %v44_v37  ;;  %603 = vmatprep.subr.mxu0 %v135_v36 }
  0x2e   :  { %534 = vmatpush1.xpose.msra.mxu1 %v117_v23  ;;  %567 = vmatprep.mubr.f32.mxu1 %v49_v38 }
  0x2f   :  { %498 = vmatmul.mubr.f32.vlgmr.msra.gmra.mxu0 %v46_v40  ;;  %673 = vmatprep.subr.mxu1 %v136_v39 }
  0x30   :  { %604 = vmatpush1.xpose.msra.mxu0 %v127_v29  ;;  %637 = vmatprep.mubr.f32.mxu0 %v51_v41 }
  0x31   :  { %568 = vmatmul.mubr.f32.vlgmr.msra.gmra.mxu1 %v48_v42 }
  0x32   :  { %674 = vmatpush1.xpose.msra.mxu1 %v134_v33  ;;  %707 = vmatprep.mubr.f32.mxu1 %v53_v43 }
  0x33   :  { %638 = vmatmul.mubr.f32.vlgmr.msra.gmra.mxu0 %v50_v44 }
  0x35   :  { %708 = vmatmul.mubr.f32.vlgmr.msra.gmra.mxu1 %v52_v45 }
  0xe7   :  { %v219_v47 = vpop.f32.mrf.mxu0  ;;  %v289_v50 = vpop.f32.mrf.mxu1 }
  0xe8   :  { %v220_v48 = vadd.f32 %v754_v46, %v219_v47 }
  0xe9   :  { %v221_v49 = vpop.f32.mrf.mxu0  ;;  %v291_v52 = vpop.f32.mrf.mxu1 }
  0xea   :  { %v290_v51 = vadd.f32 %v289_v50, %v220_v48 }
  0xeb   :  { %v359_v53 = vpop.f32.mrf.mxu0 }
  0xec   :  { %v360_v54 = vadd.f32 %v359_v53, %v290_v51 }
  0xed   :  { %v361_v55 = vpop.f32.mrf.mxu0  ;;  %v429_v56 = vpop.f32.mrf.mxu1 }
  0xee   :  { %v430_v57 = vadd.f32 %v429_v56, %v360_v54 }
  0xef   :  { %v431_v58 = vpop.f32.mrf.mxu1  ;;  %v499_v59 = vpop.f32.mrf.mxu0 }
  0xf0   :  { %v500_v60 = vadd.f32 %v499_v59, %v430_v57 }
  0xf1   :  { %v501_v61 = vpop.f32.mrf.mxu0  ;;  %v569_v62 = vpop.f32.mrf.mxu1 }
  0xf2   :  { %v570_v63 = vadd.f32 %v569_v62, %v500_v60 }
  0xf3   :  { %v571_v0 = vpop.f32.mrf.mxu1  ;;  %v639_v1 = vpop.f32.mrf.mxu0 }
  0xf4   :  { %v640_v2 = vadd.f32 %v639_v1, %v570_v63 }
  0xf5   :  { %v641_v3 = vpop.f32.mrf.mxu0  ;;  %v709_v4 = vpop.f32.mrf.mxu1 }
  0xf6   :  { %v710_v5 = vadd.f32 %v709_v4, %v640_v2 }
  0xf7   :  { %v711_v6 = vpop.f32.mrf.mxu1 }
  0xf8   :  { %714 = vrot.lane.b32.xlu0 %v710_v5, %s818_s2 }
  0xfc   :  { %719 = vrot.lane.b32.xlu0 %v710_v5, %s819_s22 }
 0x16a   :  { %v715_v7 = vpop.permute.xlu0 %714 }
 0x16b   :  { %v717_v8 = vsub.f32 %v710_v5, %v715_v7 }
 0x16d   :  { %v718_v9 = vand.u32 2147483647, %v717_v8 }
 0x16e   :  { %v720_v22 = vpop.permute.xlu0 %719 }
 0x16f   :  { %v723_v10 = vsub.f32 0.0, %v718_v9  ;;  %v722_v23 = vmax.f32 %v710_v5, %v720_v22 }
 0x171   :  { %v724_v11 = vmul.f32 1.442695, %v723_v10 }
 0x173   :  { %767 = vpow2.f32 %v724_v11 }
 0x180   :  { %v768_v12 = vpop.eup %767 }
 0x181   :  { %v726_v13 = vadd.f32 1.0, %v768_v12  ;;  %v729_v15 = vmul.f32 -0.5, %v768_v12  ;;  %v732_v17 = vand.u32 2147483647, %v768_v12 }
 0x183   :  { %769 = vlog2.f32 %v726_v13  ;;  %v730_v16 = vadd.f32 1.0, %v729_v15  ;;  %vm733_vm0 = vcmp.lt.f32.partialorder %v732_v17, 0.0004427343 }
 0x185   :  { %v731_v20 = vmul.f32 %v768_v12, %v730_v16 }
 0x190   :  { %v770_v18 = vpop.eup %769 }
 0x191   :  { %v728_v19 = vmul.f32 0.6931472, %v770_v18 }
 0x193   :  { %v734_v21 = vsel %vm733_vm0, %v731_v20, %v728_v19 }
 0x194   :  { %736 = vrot.lane.b32.xlu1 %v734_v21, %s819_s22 }
 0x206   :  { %v737_v24 = vpop.permute.xlu1 %736 }
 0x207   :  { %v739_v25 = vadd.f32 %v737_v24, %v722_v23 }
 0x209   :  { %742 = vperm.xlu1 %761, %v739_v25  }
 0x284   :  { %v743_v26 = vpop.permute.xlu1 %742 }
 0x285   :  { %v745_v27 = vsub.f32 %v710_v5, %v743_v26 }
 0x287   :  { %747 = vst.msk [vmem:[%s856_s3] sm:$0xff] %vm746_vm1, %v745_v27 }
 0x288   :  { %752 = vsyncpa [#allocation3], 1 }
 0x289   :  { %753 = vsyncpa [#allocation5], 1 }

</bundles_post_ra>
